<compile_context>
chip_gen: v7x
topology: tpu7x:2x2x1
jax: 0.10.0
libtpu: 0.0.40
codegen_flags: <defaults>
</compile_context>

<pallas_src>
import jax
import jax.numpy as jnp
from jax.experimental import pallas as pl
from jax.experimental.pallas import tpu as pltpu


# --------------------------------------------------------------------------
# kernel
# --------------------------------------------------------------------------
def vf_kernel(x_ref, w1_ref, b1_ref, w2_ref, b2_ref, w3_ref, b3_ref, o_ref):
    # layer 1: MXU matmul (bf16 or f32 inputs, f32 accumulation) + bias + ReLU
    x = x_ref[...].astype(w1_ref.dtype)          # no-op if already compute dtype
    h1 = jnp.dot(x, w1_ref[...], preferred_element_type=jnp.float32)
    h1 = jnp.maximum(h1 + b1_ref[...], 0.0)

    # layer 2: same pattern; Hp x Hp weight stays resident in VMEM
    h2 = jnp.dot(h1.astype(w2_ref.dtype), w2_ref[...],
                 preferred_element_type=jnp.float32)
    h2 = jnp.maximum(h2 + b2_ref[...], 0.0)

    # layer 3 (H -> 1): VPU multiply + XLU lane reduction instead of a
    # width-1 MXU matmul; b3 is a scalar read from SMEM.
    out = jnp.sum(h2 * w3_ref[...], axis=-1, keepdims=True) + b3_ref[0, 0]
    o_ref[...] = out.astype(o_ref.dtype)


# --------------------------------------------------------------------------
# wrapper
# --------------------------------------------------------------------------
def _round_up(n, m):
    return ((n + m - 1) // m) * m


def _pad_axis(a, axis, target):
    pad = target - a.shape[axis]
    if pad <= 0:
        return a
    widths = [(0, 0)] * a.ndim
    widths[axis] = (0, pad)
    return jnp.pad(a, widths)


def vf_forward(x, w1, b1, w2, b2, w3, b3, *, tile_b=256,
               compute_dtype=jnp.float32):
    """x: (B, S) -> (B, 1), matching VF.forward semantics.

    Weights use the (in, out) layout (transposed vs. PyTorch Linear).
    """
    x = jnp.asarray(x)
    B, S = x.shape
    H = w1.shape[1]
    Hp = _round_up(max(H, 128), 128)  # lane-aligned hidden width

    # zero-pad hidden dim; padded units stay exactly 0 after ReLU and padded
    # W2/W3 rows contribute nothing, so the result is unchanged.
    w1p = _pad_axis(w1, 1, Hp).astype(compute_dtype)
    b1p = _pad_axis(jnp.reshape(b1, (1, -1)), 1, Hp).astype(jnp.float32)
    w2p = _pad_axis(_pad_axis(w2, 0, Hp), 1, Hp).astype(compute_dtype)
    b2p = _pad_axis(jnp.reshape(b2, (1, -1)), 1, Hp).astype(jnp.float32)
    w3row = _pad_axis(jnp.reshape(w3, (1, -1)), 1, Hp).astype(jnp.float32)
    b3sc = jnp.reshape(b3, (1, 1)).astype(jnp.float32)

    # batch tiling: TB rows per grid step (x tiles are double-buffered by the
    # BlockSpec pipeline); pad B up to a TB multiple, slice off afterwards.
    TB = min(int(tile_b), _round_up(B, 8))
    Bp = _round_up(B, TB)
    # Stream x in the compute dtype: x is the only per-step DMA, so this
    # halves HBM traffic on the bf16 path (exact no-op for f32).
    xp = _pad_axis(x, 0, Bp).astype(compute_dtype)
    grid = (Bp // TB,)

    out = pl.pallas_call(
        vf_kernel,
        out_shape=jax.ShapeDtypeStruct((Bp, 1), jnp.float32),
        grid=grid,
        in_specs=[
            pl.BlockSpec((TB, S), lambda i: (i, 0)),     # x tile (streamed)
            pl.BlockSpec((S, Hp), lambda i: (0, 0)),     # W1 (VMEM-resident)
            pl.BlockSpec((1, Hp), lambda i: (0, 0)),     # b1
            pl.BlockSpec((Hp, Hp), lambda i: (0, 0)),    # W2 (VMEM-resident)
            pl.BlockSpec((1, Hp), lambda i: (0, 0)),     # b2
            pl.BlockSpec((1, Hp), lambda i: (0, 0)),     # W3 as a row
            pl.BlockSpec(memory_space=pltpu.MemorySpace.SMEM),  # b3 scalar
        ],
        out_specs=pl.BlockSpec((TB, 1), lambda i: (i, 0)),
        compiler_params=pltpu.CompilerParams(
            dimension_semantics=("parallel",)),
    )(xp, w1p, b1p, w2p, b2p, w3row, b3sc)

    return out[:B]


# --------------------------------------------------------------------------
# params + pure-JAX reference
# --------------------------------------------------------------------------
def init_params(key, state_size, hidden_size=50):
    """Deterministic synthetic init (PyTorch Linear shapes, stored as (in, out))."""
    ks = jax.random.split(key, 6)
    S, H = state_size, hidden_size
    w1 = jax.random.normal(ks[0], (S, H), jnp.float32) * 0.1
    b1 = jax.random.normal(ks[1], (1, H), jnp.float32) * 0.1
    w2 = jax.random.normal(ks[2], (H, H), jnp.float32) * 0.1
    b2 = jax.random.normal(ks[3], (1, H), jnp.float32) * 0.1
    w3 = jax.random.normal(ks[4], (H, 1), jnp.float32) * 0.1
    b3 = jax.random.normal(ks[5], (1, 1), jnp.float32) * 0.1
    return w1, b1, w2, b2, w3, b3


def vf_reference(x, w1, b1, w2, b2, w3, b3):
    h1 = jnp.maximum(x @ w1 + b1, 0.0)
    h2 = jnp.maximum(h1 @ w2 + b2, 0.0)
    return h2 @ w3 + b3


# --------------------------------------------------------------------------
# demo / correctness check
# --------------------------------------------------------------------------
if __name__ == "__main__":
    key = jax.random.PRNGKey(0)
    k_x, k_p = jax.random.split(key)

    # B deliberately not a tile multiple to exercise padding + multi-step grid.
    batch, state_size, hidden_size = 200, 32, 50
    x = jax.random.normal(k_x, (batch, state_size), jnp.float32)
    params = init_params(k_p, state_size, hidden_size)

    ref = vf_reference(x, *params)

    # f32 path (bit-exact vs reference up to accumulation order)
    out_f32 = jax.block_until_ready(
        vf_forward(x, *params, tile_b=128, compute_dtype=jnp.float32))
    assert out_f32.shape == (batch, 1), out_f32.shape
    assert jnp.allclose(out_f32, ref, atol=1e-5, rtol=1e-5), "f32 mismatch"

    # bf16 matmuls with f32 accumulation (MXU fast path, bf16 x streaming)
    out_bf16 = jax.block_until_ready(
        vf_forward(x, *params, tile_b=128, compute_dtype=jnp.bfloat16))
    assert out_bf16.shape == (batch, 1), out_bf16.shape
    assert jnp.allclose(out_bf16, ref, atol=5e-2, rtol=5e-2), "bf16 mismatch"

    print("KERNEL_OK")
</pallas_src>

<mosaic_0001>
module attributes {stable_mosaic.version = 11 : i64} {
  func.func @vf_kernel(%arg0: i32, %arg1: memref<128x32xf32, #tpu.memory_space<vmem>>, %arg2: memref<32x128xf32, #tpu.memory_space<vmem>>, %arg3: memref<1x128xf32, #tpu.memory_space<vmem>>, %arg4: memref<128x128xf32, #tpu.memory_space<vmem>>, %arg5: memref<1x128xf32, #tpu.memory_space<vmem>>, %arg6: memref<1x128xf32, #tpu.memory_space<vmem>>, %arg7: memref<1x1xf32, #tpu.memory_space<smem>>, %arg8: memref<128x1xf32, #tpu.memory_space<vmem>>) attributes {dimension_semantics = [#tpu.dimension_semantics<parallel>], iteration_bounds = array<i64: 2>, scalar_prefetch = 0 : i64, scratch_operands = 0 : i64, tpu.core_type = #tpu.core_type<tc>, window_params = [{transform_indices = @transform_0, window_bounds = array<i64: 128, 32>}, {pipeline_mode = #tpu.pipeline_mode<synchronous>, transform_indices = @transform_1, window_bounds = array<i64: 32, 128>}, {pipeline_mode = #tpu.pipeline_mode<synchronous>, transform_indices = @transform_2, window_bounds = array<i64: 1, 128>}, {pipeline_mode = #tpu.pipeline_mode<synchronous>, transform_indices = @transform_3, window_bounds = array<i64: 128, 128>}, {pipeline_mode = #tpu.pipeline_mode<synchronous>, transform_indices = @transform_4, window_bounds = array<i64: 1, 128>}, {pipeline_mode = #tpu.pipeline_mode<synchronous>, transform_indices = @transform_5, window_bounds = array<i64: 1, 128>}, {transform_indices = @transform_6, window_bounds = array<i64: 1, 1>}, {transform_indices = @transform_7, window_bounds = array<i64: 128, 1>}]} {
    %c0 = arith.constant 0 : index
    %c0_0 = arith.constant 0 : index
    %0 = vector.load %arg1[%c0, %c0_0] : memref<128x32xf32, #tpu.memory_space<vmem>>, vector<128x32xf32>
    %c0_1 = arith.constant 0 : index
    %c0_2 = arith.constant 0 : index
    %1 = vector.load %arg2[%c0_1, %c0_2] : memref<32x128xf32, #tpu.memory_space<vmem>>, vector<32x128xf32>
    %cst = arith.constant dense<0.000000e+00> : vector<128x128xf32>
    %2 = tpu.matmul %0, %1, %cst {dimension_numbers = #tpu.dot_dimension_numbers<[1], [0], [0], [1], [0, 0, 1, 1], [], []>} : vector<128x32xf32>, vector<32x128xf32>, vector<128x128xf32> -> vector<128x128xf32>
    %c0_3 = arith.constant 0 : index
    %c0_4 = arith.constant 0 : index
    %3 = vector.load %arg3[%c0_3, %c0_4] : memref<1x128xf32, #tpu.memory_space<vmem>>, vector<1x128xf32>
    %4 = vector.broadcast %3 : vector<1x128xf32> to vector<128x128xf32>
    %5 = arith.addf %2, %4 : vector<128x128xf32>
    %cst_5 = arith.constant 0.000000e+00 : f32
    %6 = vector.broadcast %cst_5 : f32 to vector<128x128xf32>
    %7 = arith.maximumf %5, %6 : vector<128x128xf32>
    %c0_6 = arith.constant 0 : index
    %c0_7 = arith.constant 0 : index
    %8 = vector.load %arg4[%c0_6, %c0_7] : memref<128x128xf32, #tpu.memory_space<vmem>>, vector<128x128xf32>
    %cst_8 = arith.constant dense<0.000000e+00> : vector<128x128xf32>
    %9 = tpu.matmul %7, %8, %cst_8 {dimension_numbers = #tpu.dot_dimension_numbers<[1], [0], [0], [1], [0, 0, 1, 1], [], []>} : vector<128x128xf32>, vector<128x128xf32>, vector<128x128xf32> -> vector<128x128xf32>
    %c0_9 = arith.constant 0 : index
    %c0_10 = arith.constant 0 : index
    %10 = vector.load %arg5[%c0_9, %c0_10] : memref<1x128xf32, #tpu.memory_space<vmem>>, vector<1x128xf32>
    %11 = vector.broadcast %10 : vector<1x128xf32> to vector<128x128xf32>
    %12 = arith.addf %9, %11 : vector<128x128xf32>
    %cst_11 = arith.constant 0.000000e+00 : f32
    %13 = vector.broadcast %cst_11 : f32 to vector<128x128xf32>
    %14 = arith.maximumf %12, %13 : vector<128x128xf32>
    %c0_12 = arith.constant 0 : index
    %c0_13 = arith.constant 0 : index
    %15 = vector.load %arg6[%c0_12, %c0_13] : memref<1x128xf32, #tpu.memory_space<vmem>>, vector<1x128xf32>
    %16 = vector.broadcast %15 : vector<1x128xf32> to vector<128x128xf32>
    %17 = arith.mulf %14, %16 : vector<128x128xf32>
    %cst_14 = arith.constant dense<0.000000e+00> : vector<128xf32>
    %18 = vector.multi_reduction <add>, %17, %cst_14 [1] : vector<128x128xf32> to vector<128xf32>
    %19 = vector.shape_cast %18 : vector<128xf32> to vector<128x1xf32>
    %c0_15 = arith.constant 0 : index
    %c0_16 = arith.constant 0 : index
    %20 = memref.load %arg7[%c0_15, %c0_16] : memref<1x1xf32, #tpu.memory_space<smem>>
    %21 = vector.broadcast %20 : f32 to vector<128x1xf32>
    %22 = arith.addf %19, %21 : vector<128x1xf32>
    %c0_17 = arith.constant 0 : index
    %c0_18 = arith.constant 0 : index
    %23 = vector.load %arg8[%c0_17, %c0_18] : memref<128x1xf32, #tpu.memory_space<vmem>>, vector<128x1xf32>
    tpu.vector_store %arg8[%c0_17, %c0_18], %22 {strides = array<i32>} : memref<128x1xf32, #tpu.memory_space<vmem>>, vector<128x1xf32>,
    return
  }
  func.func @transform_0(%arg0: i32) -> (i32, i32) {
    %c0_i32 = arith.constant 0 : i32
    %c0_i32_0 = arith.constant 0 : i32
    return %arg0, %c0_i32 : i32, i32
  }
  func.func @transform_1(%arg0: i32) -> (i32, i32) {
    %c0_i32 = arith.constant 0 : i32
    %c0_i32_0 = arith.constant 0 : i32
    %c0_i32_1 = arith.constant 0 : i32
    return %c0_i32, %c0_i32_0 : i32, i32
  }
  func.func @transform_2(%arg0: i32) -> (i32, i32) {
    %c0_i32 = arith.constant 0 : i32
    %c0_i32_0 = arith.constant 0 : i32
    %c0_i32_1 = arith.constant 0 : i32
    return %c0_i32, %c0_i32_0 : i32, i32
  }
  func.func @transform_3(%arg0: i32) -> (i32, i32) {
    %c0_i32 = arith.constant 0 : i32
    %c0_i32_0 = arith.constant 0 : i32
    %c0_i32_1 = arith.constant 0 : i32
    return %c0_i32, %c0_i32_0 : i32, i32
  }
  func.func @transform_4(%arg0: i32) -> (i32, i32) {
    %c0_i32 = arith.constant 0 : i32
    %c0_i32_0 = arith.constant 0 : i32
    %c0_i32_1 = arith.constant 0 : i32
    return %c0_i32, %c0_i32_0 : i32, i32
  }
  func.func @transform_5(%arg0: i32) -> (i32, i32) {
    %c0_i32 = arith.constant 0 : i32
    %c0_i32_0 = arith.constant 0 : i32
    %c0_i32_1 = arith.constant 0 : i32
    return %c0_i32, %c0_i32_0 : i32, i32
  }
  func.func @transform_6(%arg0: i32) -> (i32, i32) {
    %c0_i32 = arith.constant 0 : i32
    %c0_i32_0 = arith.constant 0 : i32
    %c0_i32_1 = arith.constant 0 : i32
    return %c0_i32, %c0_i32_0 : i32, i32
  }
  func.func @transform_7(%arg0: i32) -> (i32, i32) {
    %c0_i32 = arith.constant 0 : i32
    %c0_i32_0 = arith.constant 0 : i32
    return %arg0, %c0_i32 : i32, i32
  }
}

</mosaic_0001>

<bundles_post_ra>
// kernel: tpu_custom_call.1
= control target key start
LH: loop header
LB: loop body
LE: loop exit
PB: predicated region body
PF: predicated region fallthrough
CT: control target
= control target key end

     0   :  { %s1135_s26 = smov 0   ;;  %s1332_s0 = inlined_call_operand.vmem [shape: f32[256,32], index: 0, kind: input, shape index: {}]   ;;  %s1333_s1 = inlined_call_operand.vmem [shape: f32[32,128], index: 1, kind: input, shape index: {}]   ;;  %s1334_s2 = inlined_call_operand.vmem [shape: f32[1,128], index: 2, kind: input, shape index: {}]   ;;  %s1335_s3 = inlined_call_operand.vmem [shape: f32[128,128], index: 3, kind: input, shape index: {}]   ;;  %s1336_s4 = inlined_call_operand.vmem [shape: f32[1,128], index: 4, kind: input, shape index: {}]   ;;  %s1337_s5 = inlined_call_operand.vmem [shape: f32[1,128], index: 5, kind: input, shape index: {}]   ;;  %s1338_s6 = inlined_call_operand.<no memory space> [shape: f32[1,1], index: 6, kind: input, shape index: {}]   ;;  %s1339_s7 = inlined_call_operand.vmem [shape: f32[256,1], index: 7, kind: output, shape index: {}]  }
   0x1   :  { %12 = sst [smem:[#allocation2]] %s1338_s6 }
   0x2 LB: > { %s850_s27 = sadd.s32 4294967295, %s1090_s26   ;;  %p854_p0 = scmp.ge.s32.totalorder %s1090_s26, 1  ;;  %s1090_s26 = sphi %s1135_s26, %s18_s26  }
   0x3   : > { %p239_p1 = scmp.lt.s32.totalorder %s1090_s26, 3 }
   0x5   : > { %p240_p2 = pnand %p854_p0, %p239_p1 }
   0x6   : > { %v299_v0 = vld [vmem:[%s1333_s1] sm:$0xff] (!%p240_p2)  ;;  %v300_v1 = vld [vmem:[%s1333_s1 + $0x8] sm:$0xff] (!%p240_p2)  ;;  %v301_v2 = vld [vmem:[%s1333_s1 + $0x10] sm:$0xff] (!%p240_p2)  ;;  %s855_s10 = sshll.u32 (!%p240_p2), %s850_s27, 4  ;;  %vm310_vm0 = vcmask (!%p240_p2), 261120   ;;  %s759_s12 = sld [smem:[#allocation2]] (!%p240_p2) }
   0x7   : > { %243 = sbr.rel (%p240_p2) target bundleno = 632 (0x278), region = 48  ;;  %v1020_v3 = vpack.c.bf16 (!%p240_p2), %v300_v1, %v299_v0  ;;  %v302_v4 = vld [vmem:[%s1333_s1 + $0x18] sm:$0xff] (!%p240_p2)  ;;  %p272_p3 = scmp.lt.s32.totalorder (!%p240_p2), %s855_s10, 31  ;;  %v520_v5 = vld [vmem:[%s1335_s3] sm:$0xff] (!%p240_p2)  ;;  %v521_v6 = vld [vmem:[%s1335_s3 + $0x8] sm:$0xff] (!%p240_p2)  ;;  %vm777_vm1 = vcmask (!%p240_p2), 7168  }
   0x8   : > { %v1024_v7 = vpack.c.bf16 (!%p240_p2), %v302_v4, %v301_v2  ;;  %v1028_v8 = vpack.c.bf16 (!%p240_p2), %v521_v6, %v520_v5  ;;  %v522_v9 = vld [vmem:[%s1335_s3 + $0x10] sm:$0xff] (!%p240_p2)  ;;  %v523_v10 = vld [vmem:[%s1335_s3 + $0x18] sm:$0xff] (!%p240_p2)  ;;  %v524_v12 = vld [vmem:[%s1335_s3 + $0x20] sm:$0xff] (!%p240_p2) }
   0x9   : > { %1021 = vmatprep.subr.bf16.mxu0 (!%p240_p2), %v1020_v3  ;;  %v1032_v11 = vpack.c.bf16 (!%p240_p2), %v523_v10, %v522_v9  ;;  %v525_v13 = vld [vmem:[%s1335_s3 + $0x28] sm:$0xff] (!%p240_p2)  ;;  %v526_v18 = vld [vmem:[%s1335_s3 + $0x30] sm:$0xff] (!%p240_p2)  ;;  %v527_v19 = vld [vmem:[%s1335_s3 + $0x38] sm:$0xff] (!%p240_p2) }
   0xa   : > { %1023 = vmatpush3.bf16.msra.mxu0 (!%p240_p2), %v1020_v3  ;;  %1060 = vmatprep.subr.bf16.mxu1 (!%p240_p2), %v1028_v8  ;;  %v1036_v16 = vpack.c.bf16 (!%p240_p2), %v525_v13, %v524_v12  ;;  %v1040_v21 = vpack.c.bf16 (!%p240_p2), %v527_v19, %v526_v18  ;;  %v528_v23 = vld [vmem:[%s1335_s3 + $0x40] sm:$0xff] (!%p240_p2)  ;;  %v529_v24 = vld [vmem:[%s1335_s3 + $0x48] sm:$0xff] (!%p240_p2)  ;;  %v530_v28 = vld [vmem:[%s1335_s3 + $0x50] sm:$0xff] (!%p240_p2) }
   0xb   : > { %1025 = vmatprep.subr.bf16.mxu0 (!%p240_p2), %v1024_v7  ;;  %1068 = vmatpush3.bf16.msra.mxu1 (!%p240_p2), %v1028_v8  ;;  %v1044_v26 = vpack.c.bf16 (!%p240_p2), %v529_v24, %v528_v23  ;;  %v531_v29 = vld [vmem:[%s1335_s3 + $0x58] sm:$0xff] (!%p240_p2)  ;;  %v532_v33 = vld [vmem:[%s1335_s3 + $0x60] sm:$0xff] (!%p240_p2)  ;;  %v533_v34 = vld [vmem:[%s1335_s3 + $0x68] sm:$0xff] (!%p240_p2) }
   0xc   : > { %1061 = vmatprep.subr.bf16.mxu1 (!%p240_p2), %v1032_v11  ;;  %v1048_v31 = vpack.c.bf16 (!%p240_p2), %v531_v29, %v530_v28  ;;  %v1052_v36 = vpack.c.bf16 (!%p240_p2), %v533_v34, %v532_v33  ;;  %v534_v43 = vld [vmem:[%s1335_s3 + $0x70] sm:$0xff] (!%p240_p2)  ;;  %v535_v44 = vld [vmem:[%s1335_s3 + $0x78] sm:$0xff] (!%p240_p2)  ;;  %v859_v46 = vld [vmem:[%s1334_s2] ss:$0 sm:$0xff] (!%p240_p2) }
   0xd   : > { %v1056_v45 = vpack.c.bf16 (!%p240_p2), %v535_v44, %v534_v43 }
   0xe   : > { %s1341_s10 = smov (!%p272_p3, %s855_s10), 31  ;;  %1027 = vmatpush3.bf16.msra.mxu0 %v1024_v7 }
   0xf   : > { %s856_s21 = sshll.u32 %s1341_s10, 3  ;;  %1029 = vmatprep.subr.bf16.mxu0 %v1028_v8  ;;  %1069 = vmatpush3.bf16.msra.mxu1 %v1032_v11 }
  0x10   : > { %s1181_s29 = scalar_lea.vmem %s1332_s0, %s856_s21  ;;  %1062 = vmatprep.subr.bf16.mxu1 %v1036_v16  ;;  %s1295_s15 = scalar_lea.vmem %s1339_s7, %s856_s21 }
  0x11   : > { %v283_v14 = vld [vmem:[%s1181_s29] sm:$0xff]  ;;  %v284_v15 = vld [vmem:[%s1181_s29 + $0x8] sm:$0xff]  ;;  %v285_v17 = vld [vmem:[%s1181_s29 + $0x10] sm:$0xff] }
  0x12   : > { %940 = vmatprep.mubr.msk.f32.mxu0 %vm310_vm0, %v283_v14  ;;  %v286_v20 = vld [vmem:[%s1181_s29 + $0x18] sm:$0xff]  ;;  %v287_v22 = vld [vmem:[%s1181_s29 + $0x20] sm:$0xff]  ;;  %v288_v25 = vld [vmem:[%s1181_s29 + $0x28] sm:$0xff] }
  0x13   : > { %941 = vmatmul.mubr.msk.f32.vlgmr.msra.gmra.mrb[0].mxu0 %vm310_vm0, %v284_v15  ;;  %1070 = vmatpush3.bf16.msra.mxu1 %v1036_v16  ;;  %v289_v27 = vld [vmem:[%s1181_s29 + $0x30] sm:$0xff]  ;;  %v290_v30 = vld [vmem:[%s1181_s29 + $0x38] sm:$0xff]  ;;  %v291_v32 = vld [vmem:[%s1181_s29 + $0x40] sm:$0xff] }
  0x14   : > { %943 = vmatprep.mubr.msk.f32.mxu0 %vm310_vm0, %v285_v17  ;;  %1031 = vmatpush3.bf16.msra.mxu0 %v1028_v8  ;;  %v292_v35 = vld [vmem:[%s1181_s29 + $0x48] sm:$0xff]  ;;  %v293_v37 = vld [vmem:[%s1181_s29 + $0x50] sm:$0xff]  ;;  %v294_v38 = vld [vmem:[%s1181_s29 + $0x58] sm:$0xff] }
  0x15   : > { %1033 = vmatprep.subr.bf16.mxu0 %v1032_v11  ;;  %1063 = vmatprep.subr.bf16.mxu1 %v1040_v21  ;;  %v295_v39 = vld [vmem:[%s1181_s29 + $0x60] sm:$0xff]  ;;  %v296_v40 = vld [vmem:[%s1181_s29 + $0x68] sm:$0xff]  ;;  %v297_v41 = vld [vmem:[%s1181_s29 + $0x70] sm:$0xff] }
  0x16   : > { %v298_v42 = vld [vmem:[%s1181_s29 + $0x78] sm:$0xff] }
  0x17   : > { %944 = vmatmul.mubr.msk.f32.gmra.mrb[2].mxu0 %vm310_vm0, %v286_v20  ;;  %1071 = vmatpush3.bf16.msra.mxu1 %v1040_v21 }
  0x18   : > { %946 = vmatprep.mubr.msk.f32.mxu0 %vm310_vm0, %v287_v22  ;;  %1035 = vmatpush3.bf16.msra.mxu0 %v1032_v11 }
  0x19   : > { %1037 = vmatprep.subr.bf16.mxu0 %v1036_v16  ;;  %1064 = vmatprep.subr.bf16.mxu1 %v1044_v26 }
  0x1b   : > { %947 = vmatmul.mubr.msk.f32.gmra.mrb[4].mxu0 %vm310_vm0, %v288_v25  ;;  %1072 = vmatpush3.bf16.msra.mxu1 %v1044_v26 }
  0x1c   : > { %949 = vmatprep.mubr.msk.f32.mxu0 %vm310_vm0, %v289_v27  ;;  %1039 = vmatpush3.bf16.msra.mxu0 %v1036_v16 }
  0x1d   : > { %1041 = vmatprep.subr.bf16.mxu0 %v1040_v21  ;;  %1065 = vmatprep.subr.bf16.mxu1 %v1048_v31 }
  0x1f   : > { %950 = vmatmul.mubr.msk.f32.gmra.mrb[6].mxu0 %vm310_vm0, %v290_v30  ;;  %1073 = vmatpush3.bf16.msra.mxu1 %v1048_v31 }
  0x20   : > { %952 = vmatprep.mubr.msk.f32.mxu0 %vm310_vm0, %v291_v32  ;;  %1043 = vmatpush3.bf16.msra.mxu0 %v1040_v21 }
  0x21   : > { %1045 = vmatprep.subr.bf16.mxu0 %v1044_v26  ;;  %1066 = vmatprep.subr.bf16.mxu1 %v1052_v36 }
  0x23   : > { %953 = vmatmul.mubr.msk.f32.gmra.mrb[8].mxu0 %vm310_vm0, %v292_v35  ;;  %1074 = vmatpush3.bf16.msra.mxu1 %v1052_v36 }
  0x24   : > { %955 = vmatprep.mubr.msk.f32.mxu0 %vm310_vm0, %v293_v37  ;;  %1047 = vmatpush3.bf16.msra.mxu0 %v1044_v26 }
  0x25   : > { %1049 = vmatprep.subr.bf16.mxu0 %v1048_v31  ;;  %1067 = vmatprep.subr.bf16.mxu1 %v1056_v45 }
  0x27   : > { %956 = vmatmul.mubr.msk.f32.gmra.mrb[10].mxu0 %vm310_vm0, %v294_v38  ;;  %1075 = vmatpush3.bf16.msra.mxu1 %v1056_v45 }
  0x28   : > { %958 = vmatprep.mubr.msk.f32.mxu0 %vm310_vm0, %v295_v39  ;;  %1051 = vmatpush3.bf16.msra.mxu0 %v1048_v31  ;;  %v1251_v31 = vld [vmem:[%s1336_s4] ss:$0 sm:$0xff] }
  0x29   : > { %1053 = vmatprep.subr.bf16.mxu0 %v1052_v36 }
  0x2b   : > { %959 = vmatmul.mubr.msk.f32.gmra.mrb[12].mxu0 %vm310_vm0, %v296_v40 }
  0x2c   : > { %961 = vmatprep.mubr.msk.f32.mxu0 %vm310_vm0, %v297_v41  ;;  %1055 = vmatpush3.bf16.msra.mxu0 %v1052_v36  ;;  %v1258_v36 = vld [vmem:[%s1337_s5] ss:$0 sm:$0xff] }
  0x2d   : > { %1057 = vmatprep.subr.bf16.mxu0 %v1056_v45 }
  0x2f   : > { %962 = vmatmul.mubr.msk.f32.gmra.mrb[14].mxu0 %vm310_vm0, %v298_v42 }
  0x30   : > { %1059 = vmatpush3.bf16.msra.mxu0 %v1056_v45 }
  0xe6   : > { %v942_v47 = vpop.f32.mrb[0].mxu0 }
  0xe7   : > { %v431_v48 = vadd.f32 %v942_v47, %v859_v46  ;;  %v425_v49 = vpop.f32.mrb[1].mxu0 }
  0xe8   : > { %v426_v50 = vadd.f32 %v859_v46, %v425_v49 }
  0xe9   : > { %v505_v53 = vmax.f32 %v431_v48, 0.0 }
  0xea   : > { %v504_v51 = vmax.f32 %v426_v50, 0.0  ;;  %v945_v52 = vpop.f32.mrb[2].mxu0 }
  0xeb   : > { %v441_v54 = vadd.f32 %v945_v52, %v859_v46  ;;  %v435_v55 = vpop.f32.mrb[3].mxu0 }
  0xec   : > { %v436_v56 = vadd.f32 %v859_v46, %v435_v55  ;;  %996 = vmatprep.mubr.f32.mxu0 %v504_v51 }
  0xed   : > { %997 = vmatmul.mubr.f32.vlgmr.msra.gmra.mrb[16].mxu0 %v505_v53  ;;  %v507_v59 = vmax.f32 %v441_v54, 0.0 }
  0xee   : > { %v506_v57 = vmax.f32 %v436_v56, 0.0  ;;  %v948_v58 = vpop.f32.mrb[4].mxu0 }
  0xef   : > { %v451_v60 = vadd.f32 %v948_v58, %v859_v46  ;;  %v445_v61 = vpop.f32.mrb[5].mxu0 }
  0xf0   : > { %v446_v62 = vadd.f32 %v859_v46, %v445_v61  ;;  %999 = vmatprep.mubr.f32.mxu0 %v506_v57 }
  0xf1   : > { %v509_v63 = vmax.f32 %v451_v60, 0.0  ;;  %1000 = vmatmul.mubr.f32.gmra.mrb[18].mxu0 %v507_v59 }
  0xf2   : > { %v508_v0 = vmax.f32 %v446_v62, 0.0  ;;  %v951_v1 = vpop.f32.mrb[6].mxu0 }
  0xf3   : > { %v461_v2 = vadd.f32 %v951_v1, %v859_v46  ;;  %v455_v3 = vpop.f32.mrb[7].mxu0 }
  0xf4   : > { %1002 = vmatprep.mubr.f32.mxu0 %v508_v0  ;;  %v456_v4 = vadd.f32 %v859_v46, %v455_v3 }
  0xf5   : > { %v511_v5 = vmax.f32 %v461_v2, 0.0  ;;  %1003 = vmatmul.mubr.f32.gmra.mrb[20].mxu0 %v509_v63 }
  0xf6   : > { %v954_v6 = vpop.f32.mrb[8].mxu0  ;;  %v510_v7 = vmax.f32 %v456_v4, 0.0 }
  0xf7   : > { %v471_v8 = vadd.f32 %v954_v6, %v859_v46  ;;  %v465_v9 = vpop.f32.mrb[9].mxu0 }
  0xf8   : > { %v466_v10 = vadd.f32 %v859_v46, %v465_v9  ;;  %1005 = vmatprep.mubr.f32.mxu1 %v510_v7 }
  0xf9   : > { %v513_v11 = vmax.f32 %v471_v8, 0.0  ;;  %1006 = vmatmul.mubr.f32.vlgmr.msra.gmra.mrb[0].mxu1 %v511_v5 }
  0xfa   : > { %v512_v12 = vmax.f32 %v466_v10, 0.0  ;;  %v957_v13 = vpop.f32.mrb[10].mxu0 }
  0xfb   : > { %v481_v14 = vadd.f32 %v957_v13, %v859_v46  ;;  %v475_v15 = vpop.f32.mrb[11].mxu0 }
  0xfc   : > { %v476_v16 = vadd.f32 %v859_v46, %v475_v15  ;;  %1008 = vmatprep.mubr.f32.mxu1 %v512_v12 }
  0xfd   : > { %v515_v17 = vmax.f32 %v481_v14, 0.0  ;;  %1009 = vmatmul.mubr.f32.gmra.mrb[2].mxu1 %v513_v11 }
  0xfe   : > { %v514_v18 = vmax.f32 %v476_v16, 0.0  ;;  %v960_v19 = vpop.f32.mrb[12].mxu0 }
  0xff   : > { %v491_v20 = vadd.f32 %v960_v19, %v859_v46  ;;  %v485_v21 = vpop.f32.mrb[13].mxu0 }
 0x100   : > { %v486_v22 = vadd.f32 %v859_v46, %v485_v21  ;;  %1011 = vmatprep.mubr.f32.mxu1 %v514_v18 }
 0x101   : > { %v517_v23 = vmax.f32 %v491_v20, 0.0  ;;  %1012 = vmatmul.mubr.f32.gmra.mrb[4].mxu1 %v515_v17 }
 0x102   : > { %v516_v24 = vmax.f32 %v486_v22, 0.0  ;;  %v963_v25 = vpop.f32.mrb[14].mxu0 }
 0x103   : > { %v501_v26 = vadd.f32 %v963_v25, %v859_v46  ;;  %v495_v27 = vpop.f32.mrb[15].mxu0 }
 0x104   : > { %v496_v28 = vadd.f32 %v859_v46, %v495_v27  ;;  %1014 = vmatprep.mubr.f32.mxu1 %v516_v24 }
 0x105   : > { %v519_v29 = vmax.f32 %v501_v26, 0.0  ;;  %1015 = vmatmul.mubr.f32.gmra.mrb[6].mxu1 %v517_v23 }
 0x106   : > { %v518_v30 = vmax.f32 %v496_v28, 0.0 }
 0x108   : > { %1017 = vmatprep.mubr.f32.mxu1 %v518_v30 }
 0x109   : > { %1018 = vmatmul.mubr.f32.gmra.mrb[8].mxu1 %v519_v29 }
 0x1c0   : > { %v998_v32 = vpop.f32.mrb[16].mxu0 }
 0x1c1   : > { %v615_v33 = vadd.f32 %v998_v32, %v1251_v31  ;;  %v609_v34 = vpop.f32.mrb[17].mxu0 }
 0x1c2   : > { %v610_v35 = vadd.f32 %v1251_v31, %v609_v34  ;;  %v760_v34 = vstv %s759_s12 }
 0x1c3   : > { %v689_v37 = vmax.f32 %v615_v33, 0.0 }
 0x1c4   : > { %v1001_v38 = vpop.f32.mrb[18].mxu0  ;;  %v688_v39 = vmax.f32 %v610_v35, 0.0 }
 0x1c5   : > { %v625_v40 = vadd.f32 %v1001_v38, %v1251_v31  ;;  %v619_v41 = vpop.f32.mrb[19].mxu0  ;;  %v712_v42 = vmul.f32 %v1258_v36, %v689_v37 }
 0x1c6   : > { %v620_v43 = vadd.f32 %v1251_v31, %v619_v41  ;;  %v711_v50 = vmul.f32 %v1258_v36, %v688_v39 }
 0x1c7   : > { %v691_v44 = vmax.f32 %v625_v40, 0.0  ;;  %729 = vadd.xlane.f32.xlu0 %v712_v42 }
 0x1c8   : > { %v1004_v45 = vpop.f32.mrb[20].mxu0  ;;  %v690_v46 = vmax.f32 %v620_v43, 0.0 }
 0x1c9   : > { %v635_v47 = vadd.f32 %v1004_v45, %v1251_v31  ;;  %v629_v48 = vpop.f32.mrb[21].mxu0  ;;  %v714_v49 = vmul.f32 %v1258_v36, %v691_v44 }
 0x1ca   : > { %v630_v51 = vadd.f32 %v1251_v31, %v629_v48  ;;  %v713_v57 = vmul.f32 %v1258_v36, %v690_v46 }
 0x1cb   : > { %733 = vadd.xlane.f32.xlu1 %v714_v49  ;;  %727 = vadd.xlane.f32.xlu0 %v711_v50  ;;  %v693_v54 = vmax.f32 %v635_v47, 0.0 }
 0x1cc   : > { %v692_v52 = vmax.f32 %v630_v51, 0.0  ;;  %v1007_v53 = vpop.f32.mrb[0].mxu1 }
 0x1cd   : > { %v645_v55 = vadd.f32 %v1007_v53, %v1251_v31  ;;  %v639_v56 = vpop.f32.mrb[1].mxu1  ;;  %v716_v1 = vmul.f32 %v1258_v36, %v693_v54 }
 0x1ce   : > { %v640_v58 = vadd.f32 %v1251_v31, %v639_v56  ;;  %v715_v59 = vmul.f32 %v1258_v36, %v692_v52 }
 0x1cf   : > { %731 = vadd.xlane.f32.xlu1 %v713_v57  ;;  %v695_v62 = vmax.f32 %v645_v55, 0.0 }
 0x1d0   : > { %v694_v60 = vmax.f32 %v640_v58, 0.0  ;;  %v1010_v61 = vpop.f32.mrb[2].mxu1  ;;  %735 = vadd.xlane.f32.xlu0 %v715_v59 }
 0x1d1   : > { %v655_v63 = vadd.f32 %v1010_v61, %v1251_v31  ;;  %v649_v0 = vpop.f32.mrb[3].mxu1  ;;  %v718_v9 = vmul.f32 %v1258_v36, %v695_v62 }
 0x1d2   : > { %v650_v2 = vadd.f32 %v1251_v31, %v649_v0  ;;  %v717_v3 = vmul.f32 %v1258_v36, %v694_v60 }
 0x1d3   : > { %737 = vadd.xlane.f32.xlu1 %v716_v1  ;;  %v697_v6 = vmax.f32 %v655_v63, 0.0 }
 0x1d4   : > { %v696_v4 = vmax.f32 %v650_v2, 0.0  ;;  %v1013_v5 = vpop.f32.mrb[4].mxu1  ;;  %739 = vadd.xlane.f32.xlu0 %v717_v3 }
 0x1d5   : > { %v665_v7 = vadd.f32 %v1013_v5, %v1251_v31  ;;  %v659_v8 = vpop.f32.mrb[5].mxu1  ;;  %v720_v17 = vmul.f32 %v1258_v36, %v697_v6 }
 0x1d6   : > { %v660_v10 = vadd.f32 %v1251_v31, %v659_v8  ;;  %v719_v11 = vmul.f32 %v1258_v36, %v696_v4 }
 0x1d7   : > { %741 = vadd.xlane.f32.xlu1 %v718_v9  ;;  %v699_v14 = vmax.f32 %v665_v7, 0.0 }
 0x1d8   : > { %v698_v12 = vmax.f32 %v660_v10, 0.0  ;;  %v1016_v13 = vpop.f32.mrb[6].mxu1  ;;  %743 = vadd.xlane.f32.xlu0 %v719_v11 }
 0x1d9   : > { %v675_v15 = vadd.f32 %v1016_v13, %v1251_v31  ;;  %v669_v16 = vpop.f32.mrb[7].mxu1  ;;  %v722_v25 = vmul.f32 %v1258_v36, %v699_v14 }
 0x1da   : > { %v670_v18 = vadd.f32 %v1251_v31, %v669_v16  ;;  %v721_v19 = vmul.f32 %v1258_v36, %v698_v12 }
 0x1db   : > { %745 = vadd.xlane.f32.xlu1 %v720_v17  ;;  %v701_v22 = vmax.f32 %v675_v15, 0.0 }
 0x1dc   : > { %v700_v20 = vmax.f32 %v670_v18, 0.0  ;;  %v1019_v21 = vpop.f32.mrb[8].mxu1  ;;  %747 = vadd.xlane.f32.xlu0 %v721_v19 }
 0x1dd   : > { %v685_v23 = vadd.f32 %v1019_v21, %v1251_v31  ;;  %v679_v24 = vpop.f32.mrb[9].mxu1  ;;  %v724_v30 = vmul.f32 %v1258_v36, %v701_v22 }
 0x1de   : > { %v680_v26 = vadd.f32 %v1251_v31, %v679_v24  ;;  %v723_v27 = vmul.f32 %v1258_v36, %v700_v20 }
 0x1df   : > { %749 = vadd.xlane.f32.xlu1 %v722_v25  ;;  %v703_v29 = vmax.f32 %v685_v23, 0.0 }
 0x1e0   : > { %v702_v28 = vmax.f32 %v680_v26, 0.0  ;;  %751 = vadd.xlane.f32.xlu0 %v723_v27 }
 0x1e1   : > { %v726_v33 = vmul.f32 %v1258_v36, %v703_v29 }
 0x1e2   : > { %v725_v32 = vmul.f32 %v1258_v36, %v702_v28 }
 0x1e3   : > { %753 = vadd.xlane.f32.xlu1 %v724_v30 }
 0x1e4   : > { %755 = vadd.xlane.f32.xlu0 %v725_v32 }
 0x1e7   : > { %757 = vadd.xlane.f32.xlu1 %v726_v33 }
 0x254   : > { %v730_v31 = vpop.xlane.xlu0 %729 }
 0x255   : > { %v762_v35 = vadd.f32 %v760_v34, %v730_v31 }
 0x257   : > { %779 = vst.msk [vmem:[%s1295_s15 + $0x8] sm:$0xff] %vm777_vm1, %v762_v35 }
 0x258   : > { %v734_v36 = vpop.xlane.xlu1 %733  ;;  %v728_v37 = vpop.xlane.xlu0 %727 }
 0x259   : > { %v764_v38 = vadd.f32 %v760_v34, %v734_v36  ;;  %v761_v39 = vadd.f32 %v760_v34, %v728_v37 }
 0x25b   : > { %781 = vst.msk [vmem:[%s1295_s15 + $0x18] sm:$0xff] %vm777_vm1, %v764_v38  ;;  %778 = vst.msk [vmem:[%s1295_s15] sm:$0xff] %vm777_vm1, %v761_v39 }
 0x25c   : > { %v732_v40 = vpop.xlane.xlu1 %731 }
 0x25d   : > { %v763_v41 = vadd.f32 %v760_v34, %v732_v40  ;;  %v736_v42 = vpop.xlane.xlu0 %735 }
 0x25e   : > { %v765_v43 = vadd.f32 %v760_v34, %v736_v42 }
 0x25f   : > { %780 = vst.msk [vmem:[%s1295_s15 + $0x10] sm:$0xff] %vm777_vm1, %v763_v41 }
 0x260   : > { %782 = vst.msk [vmem:[%s1295_s15 + $0x20] sm:$0xff] %vm777_vm1, %v765_v43  ;;  %v738_v44 = vpop.xlane.xlu1 %737 }
 0x261   : > { %v766_v45 = vadd.f32 %v760_v34, %v738_v44  ;;  %v740_v46 = vpop.xlane.xlu0 %739 }
 0x262   : > { %v767_v47 = vadd.f32 %v760_v34, %v740_v46 }
 0x263   : > { %783 = vst.msk [vmem:[%s1295_s15 + $0x28] sm:$0xff] %vm777_vm1, %v766_v45 }
 0x264   : > { %784 = vst.msk [vmem:[%s1295_s15 + $0x30] sm:$0xff] %vm777_vm1, %v767_v47  ;;  %v742_v48 = vpop.xlane.xlu1 %741 }
 0x265   : > { %v768_v49 = vadd.f32 %v760_v34, %v742_v48  ;;  %v744_v50 = vpop.xlane.xlu0 %743 }
 0x266   : > { %v769_v51 = vadd.f32 %v760_v34, %v744_v50 }
 0x267   : > { %785 = vst.msk [vmem:[%s1295_s15 + $0x38] sm:$0xff] %vm777_vm1, %v768_v49 }
 0x268   : > { %786 = vst.msk [vmem:[%s1295_s15 + $0x40] sm:$0xff] %vm777_vm1, %v769_v51  ;;  %v746_v52 = vpop.xlane.xlu1 %745 }
 0x269   : > { %v770_v53 = vadd.f32 %v760_v34, %v746_v52  ;;  %v748_v54 = vpop.xlane.xlu0 %747 }
 0x26a   : > { %v771_v55 = vadd.f32 %v760_v34, %v748_v54 }
 0x26b   : > { %787 = vst.msk [vmem:[%s1295_s15 + $0x48] sm:$0xff] %vm777_vm1, %v770_v53 }
 0x26c   : > { %788 = vst.msk [vmem:[%s1295_s15 + $0x50] sm:$0xff] %vm777_vm1, %v771_v55  ;;  %v750_v56 = vpop.xlane.xlu1 %749 }
 0x26d   : > { %v772_v57 = vadd.f32 %v760_v34, %v750_v56  ;;  %v752_v58 = vpop.xlane.xlu0 %751 }
 0x26e   : > { %v773_v59 = vadd.f32 %v760_v34, %v752_v58 }
 0x26f   : > { %789 = vst.msk [vmem:[%s1295_s15 + $0x58] sm:$0xff] %vm777_vm1, %v772_v57 }
 0x270   : > { %790 = vst.msk [vmem:[%s1295_s15 + $0x60] sm:$0xff] %vm777_vm1, %v773_v59  ;;  %v754_v60 = vpop.xlane.xlu1 %753 }
 0x271   : > { %v774_v61 = vadd.f32 %v760_v34, %v754_v60  ;;  %v756_v62 = vpop.xlane.xlu0 %755 }
 0x272   : > { %v775_v63 = vadd.f32 %v760_v34, %v756_v62 }
 0x273   : > { %791 = vst.msk [vmem:[%s1295_s15 + $0x68] sm:$0xff] %vm777_vm1, %v774_v61 }
 0x274   : > { %792 = vst.msk [vmem:[%s1295_s15 + $0x70] sm:$0xff] %vm777_vm1, %v775_v63  ;;  %v758_v0 = vpop.xlane.xlu1 %757 }
 0x275   : > { %v776_v1 = vadd.f32 %v760_v34, %v758_v0 }
 0x277   : > { %793 = vst.msk [vmem:[%s1295_s15 + $0x78] sm:$0xff] %vm777_vm1, %v776_v1 }
 0x278 PF: > { %s18_s26 = sadd.s32 1, %s1090_s26  }
 0x279   : > { %p15_p4 = scmp.ge.s32.totalorder %s18_s26, 4  }
 0x27b   :  { %17 = sbr.rel (!%p15_p4) target bundleno = 2 (0x2), region = 78 }

</bundles_post_ra>
